<compile_context>
chip_gen: v6e
topology: v6e:2x2x1
jax: 0.10.0
libtpu: 0.0.40
codegen_flags: <defaults>
</compile_context>

<pallas_src>
import math

import jax
import jax.numpy as jnp
import numpy as np
from jax.experimental import pallas as pl
from jax.experimental.pallas import tpu as pltpu

# ---- model hyper-params (small, consistent with the module) ----
SEQ = 8             # S
BATCH = 2           # B
EMBED = 32          # E  (embed_size)
HEADS = 4
HEAD_DIM = EMBED // HEADS
EXPANSION = 4       # forward_expansion
FF = EXPANSION * EMBED      # 128
EPS = 1e-5
VLANES = 128        # packed-vector lane width (>= FF)
B_TILE = 2          # batch elements per grid step (rows per tile = B_TILE * SEQ)


def _layernorm(x, gamma, beta):
    mu = jnp.mean(x, axis=-1, keepdims=True)
    var = jnp.mean((x - mu) * (x - mu), axis=-1, keepdims=True)
    return (x - mu) * jax.lax.rsqrt(var + EPS) * gamma + beta


def transformer_block_kernel(x_ref, w_attn_ref, w1_ref, w2_ref, vecs_ref,
                             hmask_ref, bias_ref, seg_ref, o_ref):
    """One grid step = one tile of B_TILE batch elements (batch-contiguous rows).

    x_ref      : (NT, E)        NT = B_TILE * S rows of the (B*S, E) flattening
    w_attn_ref : (E, 4E)  bf16  [Wq*scale | Wk | Wv | Wo]   (lane-dense, resident)
    w1_ref     : (E, FF)  bf16  FFN first linear
    w2_ref     : (FF, E)  bf16  FFN second linear
    vecs_ref   : (8, 128) f32   row0=[bq*scale|0|bv] row1=bo row2=g1 row3=be1
                                row4=b1 row5=b2 row6=g2 row7=be2
    hmask_ref  : (H*NT, E) f32  head-packing mask for the replicated K / V slabs
    bias_ref   : (NT, H*NT) f32 additive same-batch mask (0 / -1e30), per head block
    seg_ref    : (H*NT, H*NT) f32 block-diag ones -> segmented softmax denominators
    o_ref      : (NT, E)
    """
    E, H, FFW = EMBED, HEADS, FF

    x = x_ref[...]                                    # (NT, E) f32
    vecs = vecs_ref[...]                              # (8, 128)

    b_qkv = vecs[0:1, 0:3 * E]                        # (1, 3E)  (bk slot is zero)
    bo    = vecs[1:2, 0:E]
    g1    = vecs[2:3, 0:E]
    be1   = vecs[3:4, 0:E]
    b1    = vecs[4:5, 0:FFW]
    b2    = vecs[5:6, 0:E]
    g2    = vecs[6:7, 0:E]
    be2   = vecs[7:8, 0:E]

    w_attn = w_attn_ref[...]                          # (E, 4E) bf16
    xb = x.astype(jnp.bfloat16)

    # ---- fused Q/K/V projection (1/sqrt(head_dim) folded into Wq/bq) ----
    qkv = jnp.dot(xb, w_attn[:, 0:3 * E],
                  preferred_element_type=jnp.float32) + b_qkv          # (NT, 3E) f32
    q = qkv[:, 0:E]
    k = qkv[:, E:2 * E]
    v = qkv[:, 2 * E:3 * E]

    # ---- block-diagonal head packing: all heads in one slab ----
    hmask = hmask_ref[...]                            # (H*NT, E) f32
    k_bd = (jnp.tile(k, (H, 1)) * hmask).astype(jnp.bfloat16)          # (H*NT, E)
    v_bd = (jnp.tile(v, (H, 1)) * hmask).astype(jnp.bfloat16)

    # scores for all heads at once: contract on last axes (no explicit transpose)
    s = jax.lax.dot_general(q.astype(jnp.bfloat16), k_bd,
                            (((1,), (1,)), ((), ())),
                            preferred_element_type=jnp.float32)        # (NT, H*NT)
    s = s + bias_ref[...]                             # same-batch mask (additive)

    # softmax per head segment: global per-row stabilizer (softmax-invariant),
    # segmented denominator via one block-diag-ones matmul (stays lane-dense).
    s = s - jnp.max(s, axis=-1, keepdims=True)
    e = jnp.exp(s)                                    # masked entries -> exactly 0
    denom = jnp.dot(e, seg_ref[...], preferred_element_type=jnp.float32)
    p = e * pl.reciprocal(denom, approx=True)

    # context: one matmul yields the concatenated head outputs, then W_o
    ctx = jnp.dot(p.astype(jnp.bfloat16), v_bd,
                  preferred_element_type=jnp.float32)                  # (NT, E)
    attn = jnp.dot(ctx.astype(jnp.bfloat16), w_attn[:, 3 * E:4 * E],
                   preferred_element_type=jnp.float32) + bo

    # ---- residual + LayerNorm 1 (f32) ----
    h1 = _layernorm(x + attn, g1, be1)

    # ---- feed-forward: Linear -> ReLU -> Linear ----
    ff = jnp.dot(h1.astype(jnp.bfloat16), w1_ref[...],
                 preferred_element_type=jnp.float32) + b1
    ff = jnp.maximum(ff, 0.0)
    ff = jnp.dot(ff.astype(jnp.bfloat16), w2_ref[...],
                 preferred_element_type=jnp.float32) + b2

    # ---- residual + LayerNorm 2 (f32) ----
    o_ref[...] = _layernorm(h1 + ff, g2, be2)


@jax.jit
def transformer_block(x_sbe, packed):
    """x_sbe: (S, B, E) float32 (PyTorch seq-first layout). Returns (S, B, E)."""
    S, B, E = x_sbe.shape
    assert B % B_TILE == 0, "batch must be a multiple of B_TILE"
    nt = B_TILE * S                                   # rows per grid step
    n_tiles = B // B_TILE

    # batch-contiguous row flattening: row r <-> (batch r // S, seq r % S)
    x_rows = jnp.transpose(x_sbe, (1, 0, 2)).reshape(B * S, E)

    grid_spec = pltpu.PrefetchScalarGridSpec(
        num_scalar_prefetch=0,
        grid=(n_tiles,),
        in_specs=[
            pl.BlockSpec((nt, E), lambda i: (i, 0)),                    # x row tile
            pl.BlockSpec((EMBED, 4 * EMBED), lambda i: (0, 0)),         # w_attn (resident)
            pl.BlockSpec((EMBED, FF), lambda i: (0, 0)),                # w1     (resident)
            pl.BlockSpec((FF, EMBED), lambda i: (0, 0)),                # w2     (resident)
            pl.BlockSpec((8, VLANES), lambda i: (0, 0)),                # packed vectors
            pl.BlockSpec((HEADS * nt, EMBED), lambda i: (0, 0)),        # head-pack mask
            pl.BlockSpec((nt, HEADS * nt), lambda i: (0, 0)),           # attn bias mask
            pl.BlockSpec((HEADS * nt, HEADS * nt), lambda i: (0, 0)),   # segment-sum ones
        ],
        out_specs=pl.BlockSpec((nt, E), lambda i: (i, 0)),
    )

    out_rows = pl.pallas_call(
        transformer_block_kernel,
        out_shape=jax.ShapeDtypeStruct((B * S, E), jnp.float32),
        grid_spec=grid_spec,
        compiler_params=pltpu.CompilerParams(
            dimension_semantics=("parallel",)),       # shards batch tiles across TCs
    )(x_rows, packed["w_attn"], packed["w1"], packed["w2"], packed["vecs"],
      packed["hmask"], packed["bias"], packed["segsum"])

    return out_rows.reshape(B, S, E).transpose(1, 0, 2)


def make_params(key):
    """Deterministic synthetic parameters (weights stored transposed so the
    kernel computes x @ W; PyTorch Linear does x @ W.T)."""
    ks = jax.random.split(key, 8)
    init = lambda k, shape: jax.random.normal(k, shape, jnp.float32) * 0.05
    return dict(
        wq=init(ks[0], (EMBED, EMBED)), wk=init(ks[1], (EMBED, EMBED)),
        wv=init(ks[2], (EMBED, EMBED)),
        bq=init(ks[3], (1, EMBED)), bk=init(ks[4], (1, EMBED)),
        bv=init(ks[5], (1, EMBED)),
        wo=init(ks[6], (EMBED, EMBED)), bo=jnp.zeros((1, EMBED), jnp.float32),
        g1=jnp.ones((1, EMBED), jnp.float32), be1=jnp.zeros((1, EMBED), jnp.float32),
        w1=init(ks[7], (EMBED, FF)), b1=jnp.zeros((1, FF), jnp.float32),
        w2=init(jax.random.fold_in(key, 99), (FF, EMBED)),
        b2=jnp.zeros((1, EMBED), jnp.float32),
        g2=jnp.ones((1, EMBED), jnp.float32), be2=jnp.zeros((1, EMBED), jnp.float32),
    )


def pack_params(p, *, b_tile=B_TILE, seq=SEQ):
    """Pack the 17 small operands into a few lane-dense arrays for the kernel.
    Matmul weights are stored bf16 (MXU-native); vectors/masks stay f32."""
    scale = 1.0 / math.sqrt(HEAD_DIM)
    w_attn = jnp.concatenate(
        [p["wq"] * scale, p["wk"], p["wv"], p["wo"]],
        axis=1).astype(jnp.bfloat16)                                  # (E, 4E) = (32, 128)

    def row(v):
        v = jnp.asarray(v, jnp.float32).reshape(-1)
        return jnp.pad(v, (0, VLANES - v.shape[0]))

    # bk dropped: softmax over keys is invariant to the constant q_i . bk shift.
    vecs = jnp.stack([
        row(jnp.concatenate([p["bq"].reshape(-1) * scale,
                             jnp.zeros((EMBED,), jnp.float32),
                             p["bv"].reshape(-1)])),                  # row 0: b_qkv
        row(p["bo"]),                                                 # row 1
        row(p["g1"]), row(p["be1"]),                                  # rows 2-3
        row(p["b1"]), row(p["b2"]),                                   # rows 4-5
        row(p["g2"]), row(p["be2"]),                                  # rows 6-7
    ], axis=0)                                                        # (8, 128)

    nt = b_tile * seq
    # additive same-batch mask, tiled across the H head blocks: (nt, H*nt)
    rb = np.arange(nt)[:, None] // seq
    cb = np.arange(nt)[None, :] // seq
    same = np.tile(rb == cb, (1, HEADS))
    bias = np.where(same, 0.0, -1e30).astype(np.float32)
    # head-packing mask for the replicated K/V slabs: (H*nt, E)
    hm = np.zeros((HEADS * nt, EMBED), np.float32)
    for h in range(HEADS):
        hm[h * nt:(h + 1) * nt, h * HEAD_DIM:(h + 1) * HEAD_DIM] = 1.0
    # block-diag ones for segmented softmax denominators: (H*nt, H*nt)
    seg = np.kron(np.eye(HEADS, dtype=np.float32), np.ones((nt, nt), np.float32))

    return dict(w_attn=w_attn,
                w1=p["w1"].astype(jnp.bfloat16),
                w2=p["w2"].astype(jnp.bfloat16),
                vecs=vecs,
                hmask=jnp.asarray(hm),
                bias=jnp.asarray(bias),
                segsum=jnp.asarray(seg))


def reference_forward(x_sbe, p):
    """Pure-JAX f32 reference mirroring PyTorch semantics (unpacked params)."""
    xb = jnp.transpose(x_sbe, (1, 0, 2))                              # (B, S, E)
    B, S, E = xb.shape
    q = xb @ p["wq"] + p["bq"]
    k = xb @ p["wk"] + p["bk"]
    v = xb @ p["wv"] + p["bv"]
    split = lambda t: t.reshape(B, S, HEADS, HEAD_DIM).transpose(0, 2, 1, 3)
    qh, kh, vh = split(q) / math.sqrt(HEAD_DIM), split(k), split(v)
    s = qh @ kh.transpose(0, 1, 3, 2)
    a = jax.nn.softmax(s, axis=-1) @ vh                               # (B, H, S, Dh)
    a = a.transpose(0, 2, 1, 3).reshape(B, S, E)
    a = a @ p["wo"] + p["bo"]
    h1 = _layernorm(xb + a, p["g1"], p["be1"])
    ff = jnp.maximum(h1 @ p["w1"] + p["b1"], 0.0) @ p["w2"] + p["b2"]
    out = _layernorm(h1 + ff, p["g2"], p["be2"])
    return out.transpose(1, 0, 2)                                     # (S, B, E)


if __name__ == "__main__":
    key = jax.random.PRNGKey(0)
    kx, kp = jax.random.split(key)
    x = jax.random.normal(kx, (SEQ, BATCH, EMBED), jnp.float32)       # (S, B, E)
    raw = make_params(kp)
    packed = pack_params(raw)

    out = jax.block_until_ready(transformer_block(x, packed))
    ref = jax.block_until_ready(reference_forward(x, raw))

    # bf16 matmul operands + approx reciprocal in the softmax -> relaxed tolerance
    np.testing.assert_allclose(np.asarray(out), np.asarray(ref), atol=2e-2, rtol=2e-2)

    print("KERNEL_OK")
</pallas_src>

<mosaic_0001>
module attributes {stable_mosaic.version = 11 : i64} {
  func.func @transformer_block_kernel(%arg0: i32, %arg1: memref<16x32xf32, #tpu.memory_space<vmem>>, %arg2: memref<32x128xbf16, #tpu.memory_space<vmem>>, %arg3: memref<32x128xbf16, #tpu.memory_space<vmem>>, %arg4: memref<128x32xbf16, #tpu.memory_space<vmem>>, %arg5: memref<8x128xf32, #tpu.memory_space<vmem>>, %arg6: memref<64x32xf32, #tpu.memory_space<vmem>>, %arg7: memref<16x64xf32, #tpu.memory_space<vmem>>, %arg8: memref<64x64xf32, #tpu.memory_space<vmem>>, %arg9: memref<16x32xf32, #tpu.memory_space<vmem>>) attributes {dimension_semantics = [#tpu.dimension_semantics<parallel>], iteration_bounds = array<i64: 1>, scalar_prefetch = 0 : i64, scratch_operands = 0 : i64, tpu.core_type = #tpu.core_type<tc>, window_params = [{transform_indices = @transform_0, window_bounds = array<i64: 16, 32>}, {pipeline_mode = #tpu.pipeline_mode<synchronous>, transform_indices = @transform_1, window_bounds = array<i64: 32, 128>}, {pipeline_mode = #tpu.pipeline_mode<synchronous>, transform_indices = @transform_2, window_bounds = array<i64: 32, 128>}, {pipeline_mode = #tpu.pipeline_mode<synchronous>, transform_indices = @transform_3, window_bounds = array<i64: 128, 32>}, {pipeline_mode = #tpu.pipeline_mode<synchronous>, transform_indices = @transform_4, window_bounds = array<i64: 8, 128>}, {pipeline_mode = #tpu.pipeline_mode<synchronous>, transform_indices = @transform_5, window_bounds = array<i64: 64, 32>}, {pipeline_mode = #tpu.pipeline_mode<synchronous>, transform_indices = @transform_6, window_bounds = array<i64: 16, 64>}, {pipeline_mode = #tpu.pipeline_mode<synchronous>, transform_indices = @transform_7, window_bounds = array<i64: 64, 64>}, {transform_indices = @transform_8, window_bounds = array<i64: 16, 32>}]} {
    %c0 = arith.constant 0 : index
    %c0_0 = arith.constant 0 : index
    %0 = vector.load %arg1[%c0, %c0_0] : memref<16x32xf32, #tpu.memory_space<vmem>>, vector<16x32xf32>
    %c0_1 = arith.constant 0 : index
    %c0_2 = arith.constant 0 : index
    %1 = vector.load %arg5[%c0_1, %c0_2] : memref<8x128xf32, #tpu.memory_space<vmem>>, vector<8x128xf32>
    %2 = vector.extract_strided_slice %1 {offsets = [0, 0], sizes = [1, 96], strides = [1, 1]} : vector<8x128xf32> to vector<1x96xf32>
    %3 = vector.extract_strided_slice %1 {offsets = [1, 0], sizes = [1, 32], strides = [1, 1]} : vector<8x128xf32> to vector<1x32xf32>
    %4 = vector.extract_strided_slice %1 {offsets = [2, 0], sizes = [1, 32], strides = [1, 1]} : vector<8x128xf32> to vector<1x32xf32>
    %5 = vector.extract_strided_slice %1 {offsets = [3, 0], sizes = [1, 32], strides = [1, 1]} : vector<8x128xf32> to vector<1x32xf32>
    %6 = vector.extract_strided_slice %1 {offsets = [4, 0], sizes = [1, 128], strides = [1, 1]} : vector<8x128xf32> to vector<1x128xf32>
    %7 = vector.extract_strided_slice %1 {offsets = [5, 0], sizes = [1, 32], strides = [1, 1]} : vector<8x128xf32> to vector<1x32xf32>
    %8 = vector.extract_strided_slice %1 {offsets = [6, 0], sizes = [1, 32], strides = [1, 1]} : vector<8x128xf32> to vector<1x32xf32>
    %9 = vector.extract_strided_slice %1 {offsets = [7, 0], sizes = [1, 32], strides = [1, 1]} : vector<8x128xf32> to vector<1x32xf32>
    %c0_3 = arith.constant 0 : index
    %c0_4 = arith.constant 0 : index
    %10 = vector.load %arg2[%c0_3, %c0_4] : memref<32x128xbf16, #tpu.memory_space<vmem>>, vector<32x128xbf16>
    %11 = arith.truncf %0 : vector<16x32xf32> to vector<16x32xbf16>
    %12 = vector.extract_strided_slice %10 {offsets = [0, 0], sizes = [32, 96], strides = [1, 1]} : vector<32x128xbf16> to vector<32x96xbf16>
    %cst = arith.constant dense<0.000000e+00> : vector<16x96xf32>
    %13 = tpu.matmul %11, %12, %cst {dimension_numbers = #tpu.dot_dimension_numbers<[1], [0], [0], [1], [0, 0, 1, 1], [], []>} : vector<16x32xbf16>, vector<32x96xbf16>, vector<16x96xf32> -> vector<16x96xf32>
    %14 = vector.broadcast %2 : vector<1x96xf32> to vector<16x96xf32>
    %15 = arith.addf %13, %14 : vector<16x96xf32>
    %16 = vector.extract_strided_slice %15 {offsets = [0, 0], sizes = [16, 32], strides = [1, 1]} : vector<16x96xf32> to vector<16x32xf32>
    %17 = vector.extract_strided_slice %15 {offsets = [0, 32], sizes = [16, 32], strides = [1, 1]} : vector<16x96xf32> to vector<16x32xf32>
    %18 = vector.extract_strided_slice %15 {offsets = [0, 64], sizes = [16, 32], strides = [1, 1]} : vector<16x96xf32> to vector<16x32xf32>
    %c0_5 = arith.constant 0 : index
    %c0_6 = arith.constant 0 : index
    %19 = vector.load %arg6[%c0_5, %c0_6] : memref<64x32xf32, #tpu.memory_space<vmem>>, vector<64x32xf32>
    %20 = tpu.concatenate %17, %17, %17, %17 in 0 : vector<16x32xf32>, vector<16x32xf32>, vector<16x32xf32>, vector<16x32xf32> -> vector<64x32xf32>
    %21 = arith.mulf %20, %19 : vector<64x32xf32>
    %22 = arith.truncf %21 : vector<64x32xf32> to vector<64x32xbf16>
    %23 = tpu.concatenate %18, %18, %18, %18 in 0 : vector<16x32xf32>, vector<16x32xf32>, vector<16x32xf32>, vector<16x32xf32> -> vector<64x32xf32>
    %24 = arith.mulf %23, %19 : vector<64x32xf32>
    %25 = arith.truncf %24 : vector<64x32xf32> to vector<64x32xbf16>
    %26 = arith.truncf %16 : vector<16x32xf32> to vector<16x32xbf16>
    %cst_7 = arith.constant dense<0.000000e+00> : vector<16x64xf32>
    %27 = tpu.matmul %26, %22, %cst_7 {dimension_numbers = #tpu.dot_dimension_numbers<[1], [1], [0], [0], [0, 0, 1, 0], [], []>} : vector<16x32xbf16>, vector<64x32xbf16>, vector<16x64xf32> -> vector<16x64xf32>
    %c0_8 = arith.constant 0 : index
    %c0_9 = arith.constant 0 : index
    %28 = vector.load %arg7[%c0_8, %c0_9] : memref<16x64xf32, #tpu.memory_space<vmem>>, vector<16x64xf32>
    %29 = arith.addf %27, %28 : vector<16x64xf32>
    %cst_10 = arith.constant dense<0xFF800000> : vector<16xf32>
    %30 = vector.multi_reduction <maximumf>, %29, %cst_10 [1] : vector<16x64xf32> to vector<16xf32>
    %31 = vector.shape_cast %30 : vector<16xf32> to vector<16x1xf32>
    %32 = vector.broadcast %31 : vector<16x1xf32> to vector<16x64xf32>
    %33 = arith.subf %29, %32 : vector<16x64xf32>
    %34 = math.exp %33 : vector<16x64xf32>
    %c0_11 = arith.constant 0 : index
    %c0_12 = arith.constant 0 : index
    %35 = vector.load %arg8[%c0_11, %c0_12] : memref<64x64xf32, #tpu.memory_space<vmem>>, vector<64x64xf32>
    %cst_13 = arith.constant dense<0.000000e+00> : vector<16x64xf32>
    %36 = tpu.matmul %34, %35, %cst_13 {dimension_numbers = #tpu.dot_dimension_numbers<[1], [0], [0], [1], [0, 0, 1, 1], [], []>} : vector<16x64xf32>, vector<64x64xf32>, vector<16x64xf32> -> vector<16x64xf32>
    %37 = tpu.reciprocal %36 {approx = true} : vector<16x64xf32> -> vector<16x64xf32>
    %38 = arith.mulf %34, %37 : vector<16x64xf32>
    %39 = arith.truncf %38 : vector<16x64xf32> to vector<16x64xbf16>
    %cst_14 = arith.constant dense<0.000000e+00> : vector<16x32xf32>
    %40 = tpu.matmul %39, %25, %cst_14 {dimension_numbers = #tpu.dot_dimension_numbers<[1], [0], [0], [1], [0, 0, 1, 1], [], []>} : vector<16x64xbf16>, vector<64x32xbf16>, vector<16x32xf32> -> vector<16x32xf32>
    %41 = arith.truncf %40 : vector<16x32xf32> to vector<16x32xbf16>
    %42 = vector.extract_strided_slice %10 {offsets = [0, 96], sizes = [32, 32], strides = [1, 1]} : vector<32x128xbf16> to vector<32x32xbf16>
    %cst_15 = arith.constant dense<0.000000e+00> : vector<16x32xf32>
    %43 = tpu.matmul %41, %42, %cst_15 {dimension_numbers = #tpu.dot_dimension_numbers<[1], [0], [0], [1], [0, 0, 1, 1], [], []>} : vector<16x32xbf16>, vector<32x32xbf16>, vector<16x32xf32> -> vector<16x32xf32>
    %44 = vector.broadcast %3 : vector<1x32xf32> to vector<16x32xf32>
    %45 = arith.addf %43, %44 : vector<16x32xf32>
    %46 = arith.addf %0, %45 : vector<16x32xf32>
    %cst_16 = arith.constant dense<0.000000e+00> : vector<16xf32>
    %47 = vector.multi_reduction <add>, %46, %cst_16 [1] : vector<16x32xf32> to vector<16xf32>
    %48 = vector.shape_cast %47 : vector<16xf32> to vector<16x1xf32>
    %cst_17 = arith.constant 3.200000e+01 : f32
    %49 = vector.broadcast %cst_17 : f32 to vector<16x1xf32>
    %50 = arith.divf %48, %49 : vector<16x1xf32>
    %51 = vector.broadcast %50 : vector<16x1xf32> to vector<16x32xf32>
    %52 = arith.subf %46, %51 : vector<16x32xf32>
    %53 = vector.broadcast %50 : vector<16x1xf32> to vector<16x32xf32>
    %54 = arith.subf %46, %53 : vector<16x32xf32>
    %55 = arith.mulf %52, %54 : vector<16x32xf32>
    %cst_18 = arith.constant dense<0.000000e+00> : vector<16xf32>
    %56 = vector.multi_reduction <add>, %55, %cst_18 [1] : vector<16x32xf32> to vector<16xf32>
    %57 = vector.shape_cast %56 : vector<16xf32> to vector<16x1xf32>
    %cst_19 = arith.constant 3.200000e+01 : f32
    %58 = vector.broadcast %cst_19 : f32 to vector<16x1xf32>
    %59 = arith.divf %57, %58 : vector<16x1xf32>
    %60 = vector.broadcast %50 : vector<16x1xf32> to vector<16x32xf32>
    %61 = arith.subf %46, %60 : vector<16x32xf32>
    %cst_20 = arith.constant 9.99999974E-6 : f32
    %62 = vector.broadcast %cst_20 : f32 to vector<16x1xf32>
    %63 = arith.addf %59, %62 : vector<16x1xf32>
    %64 = math.rsqrt %63 : vector<16x1xf32>
    %65 = vector.broadcast %64 : vector<16x1xf32> to vector<16x32xf32>
    %66 = arith.mulf %61, %65 : vector<16x32xf32>
    %67 = vector.broadcast %4 : vector<1x32xf32> to vector<16x32xf32>
    %68 = arith.mulf %66, %67 : vector<16x32xf32>
    %69 = vector.broadcast %5 : vector<1x32xf32> to vector<16x32xf32>
    %70 = arith.addf %68, %69 : vector<16x32xf32>
    %71 = arith.truncf %70 : vector<16x32xf32> to vector<16x32xbf16>
    %c0_21 = arith.constant 0 : index
    %c0_22 = arith.constant 0 : index
    %72 = vector.load %arg3[%c0_21, %c0_22] : memref<32x128xbf16, #tpu.memory_space<vmem>>, vector<32x128xbf16>
    %cst_23 = arith.constant dense<0.000000e+00> : vector<16x128xf32>
    %73 = tpu.matmul %71, %72, %cst_23 {dimension_numbers = #tpu.dot_dimension_numbers<[1], [0], [0], [1], [0, 0, 1, 1], [], []>} : vector<16x32xbf16>, vector<32x128xbf16>, vector<16x128xf32> -> vector<16x128xf32>
    %74 = vector.broadcast %6 : vector<1x128xf32> to vector<16x128xf32>
    %75 = arith.addf %73, %74 : vector<16x128xf32>
    %cst_24 = arith.constant 0.000000e+00 : f32
    %76 = vector.broadcast %cst_24 : f32 to vector<16x128xf32>
    %77 = arith.maximumf %75, %76 : vector<16x128xf32>
    %78 = arith.truncf %77 : vector<16x128xf32> to vector<16x128xbf16>
    %c0_25 = arith.constant 0 : index
    %c0_26 = arith.constant 0 : index
    %79 = vector.load %arg4[%c0_25, %c0_26] : memref<128x32xbf16, #tpu.memory_space<vmem>>, vector<128x32xbf16>
    %cst_27 = arith.constant dense<0.000000e+00> : vector<16x32xf32>
    %80 = tpu.matmul %78, %79, %cst_27 {dimension_numbers = #tpu.dot_dimension_numbers<[1], [0], [0], [1], [0, 0, 1, 1], [], []>} : vector<16x128xbf16>, vector<128x32xbf16>, vector<16x32xf32> -> vector<16x32xf32>
    %81 = vector.broadcast %7 : vector<1x32xf32> to vector<16x32xf32>
    %82 = arith.addf %80, %81 : vector<16x32xf32>
    %83 = arith.addf %70, %82 : vector<16x32xf32>
    %cst_28 = arith.constant dense<0.000000e+00> : vector<16xf32>
    %84 = vector.multi_reduction <add>, %83, %cst_28 [1] : vector<16x32xf32> to vector<16xf32>
    %85 = vector.shape_cast %84 : vector<16xf32> to vector<16x1xf32>
    %cst_29 = arith.constant 3.200000e+01 : f32
    %86 = vector.broadcast %cst_29 : f32 to vector<16x1xf32>
    %87 = arith.divf %85, %86 : vector<16x1xf32>
    %88 = vector.broadcast %87 : vector<16x1xf32> to vector<16x32xf32>
    %89 = arith.subf %83, %88 : vector<16x32xf32>
    %90 = vector.broadcast %87 : vector<16x1xf32> to vector<16x32xf32>
    %91 = arith.subf %83, %90 : vector<16x32xf32>
    %92 = arith.mulf %89, %91 : vector<16x32xf32>
    %cst_30 = arith.constant dense<0.000000e+00> : vector<16xf32>
    %93 = vector.multi_reduction <add>, %92, %cst_30 [1] : vector<16x32xf32> to vector<16xf32>
    %94 = vector.shape_cast %93 : vector<16xf32> to vector<16x1xf32>
    %cst_31 = arith.constant 3.200000e+01 : f32
    %95 = vector.broadcast %cst_31 : f32 to vector<16x1xf32>
    %96 = arith.divf %94, %95 : vector<16x1xf32>
    %97 = vector.broadcast %87 : vector<16x1xf32> to vector<16x32xf32>
    %98 = arith.subf %83, %97 : vector<16x32xf32>
    %cst_32 = arith.constant 9.99999974E-6 : f32
    %99 = vector.broadcast %cst_32 : f32 to vector<16x1xf32>
    %100 = arith.addf %96, %99 : vector<16x1xf32>
    %101 = math.rsqrt %100 : vector<16x1xf32>
    %102 = vector.broadcast %101 : vector<16x1xf32> to vector<16x32xf32>
    %103 = arith.mulf %98, %102 : vector<16x32xf32>
    %104 = vector.broadcast %8 : vector<1x32xf32> to vector<16x32xf32>
    %105 = arith.mulf %103, %104 : vector<16x32xf32>
    %106 = vector.broadcast %9 : vector<1x32xf32> to vector<16x32xf32>
    %107 = arith.addf %105, %106 : vector<16x32xf32>
    %c0_33 = arith.constant 0 : index
    %c0_34 = arith.constant 0 : index
    %108 = vector.load %arg9[%c0_33, %c0_34] : memref<16x32xf32, #tpu.memory_space<vmem>>, vector<16x32xf32>
    tpu.vector_store %arg9[%c0_33, %c0_34], %107 {strides = array<i32>} : memref<16x32xf32, #tpu.memory_space<vmem>>, vector<16x32xf32>,
    return
  }
  func.func @transform_0(%arg0: i32) -> (i32, i32) {
    %c0_i32 = arith.constant 0 : i32
    %c0_i32_0 = arith.constant 0 : i32
    return %arg0, %c0_i32 : i32, i32
  }
  func.func @transform_1(%arg0: i32) -> (i32, i32) {
    %c0_i32 = arith.constant 0 : i32
    %c0_i32_0 = arith.constant 0 : i32
    %c0_i32_1 = arith.constant 0 : i32
    return %c0_i32, %c0_i32_0 : i32, i32
  }
  func.func @transform_2(%arg0: i32) -> (i32, i32) {
    %c0_i32 = arith.constant 0 : i32
    %c0_i32_0 = arith.constant 0 : i32
    %c0_i32_1 = arith.constant 0 : i32
    return %c0_i32, %c0_i32_0 : i32, i32
  }
  func.func @transform_3(%arg0: i32) -> (i32, i32) {
    %c0_i32 = arith.constant 0 : i32
    %c0_i32_0 = arith.constant 0 : i32
    %c0_i32_1 = arith.constant 0 : i32
    return %c0_i32, %c0_i32_0 : i32, i32
  }
  func.func @transform_4(%arg0: i32) -> (i32, i32) {
    %c0_i32 = arith.constant 0 : i32
    %c0_i32_0 = arith.constant 0 : i32
    %c0_i32_1 = arith.constant 0 : i32
    return %c0_i32, %c0_i32_0 : i32, i32
  }
  func.func @transform_5(%arg0: i32) -> (i32, i32) {
    %c0_i32 = arith.constant 0 : i32
    %c0_i32_0 = arith.constant 0 : i32
    %c0_i32_1 = arith.constant 0 : i32
    return %c0_i32, %c0_i32_0 : i32, i32
  }
  func.func @transform_6(%arg0: i32) -> (i32, i32) {
    %c0_i32 = arith.constant 0 : i32
    %c0_i32_0 = arith.constant 0 : i32
    %c0_i32_1 = arith.constant 0 : i32
    return %c0_i32, %c0_i32_0 : i32, i32
  }
  func.func @transform_7(%arg0: i32) -> (i32, i32) {
    %c0_i32 = arith.constant 0 : i32
    %c0_i32_0 = arith.constant 0 : i32
    %c0_i32_1 = arith.constant 0 : i32
    return %c0_i32, %c0_i32_0 : i32, i32
  }
  func.func @transform_8(%arg0: i32) -> (i32, i32) {
    %c0_i32 = arith.constant 0 : i32
    %c0_i32_0 = arith.constant 0 : i32
    return %arg0, %c0_i32 : i32, i32
  }
}

</mosaic_0001>

<bundles_post_ra>
// kernel: transformer_block.1
= control target key start
LH: loop header
LB: loop body
LE: loop exit
PB: predicated region body
PF: predicated region fallthrough
CT: control target
= control target key end

     0   :  { %v921_v0 = vmov 0.0   ;;  %vm922_vm0 = vmmov 0   ;;  %s923_s14 = smov 32   ;;  %vm54_vm1 = vcmask 261120   ;;  %v38_v14 = vlaneseq  ;;  %s925_s16 = smov 64   ;;  %s1245_s1 = inlined_call_operand.vmem [shape: bf16[32,128], index: 1, kind: input, shape index: {}]   ;;  %s1246_s0 = inlined_call_operand.vmem [shape: f32[16,32], index: 0, kind: input, shape index: {}]   ;;  %s1247_s5 = inlined_call_operand.vmem [shape: f32[64,32], index: 5, kind: input, shape index: {}]   ;;  %s1248_s4 = inlined_call_operand.vmem [shape: f32[8,128], index: 4, kind: input, shape index: {}]   ;;  %s1249_s6 = inlined_call_operand.vmem [shape: f32[16,64], index: 6, kind: input, shape index: {}]   ;;  %s1250_s7 = inlined_call_operand.vmem [shape: f32[64,64], index: 7, kind: input, shape index: {}]   ;;  %s1251_s2 = inlined_call_operand.vmem [shape: bf16[32,128], index: 2, kind: input, shape index: {}]   ;;  %s1252_s3 = inlined_call_operand.vmem [shape: bf16[128,32], index: 3, kind: input, shape index: {}]   ;;  %s1253_s8 = inlined_call_operand.vmem [shape: f32[16,32], index: 8, kind: output, shape index: {}]  }
   0x1   :  { %801 = vmatprep.subr.bf16.mxu0 %v921_v0  ;;  %v975_v1 = vld [vmem:[%s1245_s1 + $0x8] sm:$0xff]   ;;  %805 = vmatprep.mubr.msk.bf16.mxu0 %vm922_vm0, %v921_v0  ;;  %v982_v2 = vld [vmem:[%s1245_s1] sm:$0xff]   ;;  %v1001_v5 = vld [vmem:[%s1247_s5 + $0x30] sm:$0xff]  ;;  %vm258_vm2 = vcmask 523264  }
   0x2   :  { %809 = vmatprep.subr.bf16.mxu1 %v921_v0  ;;  %817 = vmatprep.mubr.msk.bf16.mxu1 %vm922_vm0, %v921_v0  ;;  %v991_v3 = vld [vmem:[%s1246_s0] sm:$0xff]  ;;  %v996_v4 = vld [vmem:[%s1246_s0 + $0x8] sm:$0xff]  ;;  %v1014_v7 = vld [vmem:[%s1247_s5 + $0x38] sm:$0xff]  ;;  %v1059_v17 = vshrl.u32 %v38_v14, 7 }
   0x3   :  { %802 = vmatpush3.bf16.msra.mxu0 %v975_v1  ;;  %127 = vrot.lane.b32.xlu0 %v1001_v5, %s923_s14  ;;  %v1009_v6 = vld [vmem:[%s1247_s5 + $0x20] sm:$0xff]  ;;  %v37_v8 = vpack.c.bf16 %v996_v4, %v991_v3  ;;  %v1023_v9 = vld [vmem:[%s1247_s5 + $0x28] sm:$0xff]  ;;  %v1033_v10 = vld [vmem:[%s1247_s5 + $0x10] sm:$0xff] }
   0x4   :  { %803 = vmatprep.subr.bf16.mxu0 %v921_v0  ;;  %123 = vrot.lane.b32.xlu1 %v1009_v6, %s923_s14  ;;  %v1039_v11 = vld [vmem:[%s1247_s5 + $0x18] sm:$0xff]  ;;  %v1048_v12 = vld [vmem:[%s1247_s5] sm:$0xff]  ;;  %v1053_v13 = vld [vmem:[%s1247_s5 + $0x8] sm:$0xff]  ;;  %v40_v19 = vsub.s32 0, %v1059_v17 }
   0x5   :  { %v1065_v21 = vld [vmem:[%s1248_s4] sm:$0xff]  ;;  %s924_s4 = smov 96   ;;  %v189_v58 = vld [vmem:[%s1249_s6 + $0x8] sm:$0xff]  ;;  %v277_v14 = vld [vmem:[%s1250_s7 + $0x30] sm:$0xff] }
   0x6   :  { %v41_v22 = vrot.slane %v1065_v21, %v40_v19  ;;  %v188_v54 = vld [vmem:[%s1249_s6] sm:$0xff] }
   0x7   :  { %804 = vmatpush3.bf16.msra.mxu0 %v982_v2  ;;  %129 = vrot.lane.b32.xlu0 %v1014_v7, %s923_s14 }
   0x8   :  { %125 = vrot.lane.b32.xlu1 %v1023_v9, %s923_s14 }
   0xa   :  { %806 = vmatmul.mubr.msk.bf16.vlgmr.msra.gmra.mxu0 %vm54_vm1, %v37_v8  ;;  %v278_v8 = vld [vmem:[%s1250_s7 + $0x38] sm:$0xff] }
   0xb   :  { %119 = vrot.lane.b32.xlu0 %v1033_v10, %s923_s14  ;;  %821 = vmatprep.subr.mxu0 %v278_v8 }
   0xc   :  { %121 = vrot.lane.b32.xlu1 %v1039_v11, %s923_s14  ;;  %822 = vmatpush3.msra.mxu0 %v278_v8 }
   0xd   :  { %823 = vmatprep.subr.mxu0 %v277_v14 }
   0xe   :  { %824 = vmatpush3.msra.mxu0 %v277_v14 }
   0xf   :  { %115 = vrot.lane.b32.xlu0 %v1048_v12, %s923_s14 }
  0x10   :  { %117 = vrot.lane.b32.xlu1 %v1053_v13, %s923_s14 }
  0x75   :  { %v128_v16 = vpop.permute.xlu0 %127 }
  0x76   :  { %v124_v15 = vpop.permute.xlu1 %123 }
  0x79   :  { %v130_v20 = vpop.permute.xlu0 %129 }
  0x7a   :  { %v126_v18 = vpop.permute.xlu1 %125 }
  0x7d   :  { %v120_v25 = vpop.permute.xlu0 %119 }
  0x7e   :  { %v122_v24 = vpop.permute.xlu1 %121 }
  0x81   :  { %v116_v36 = vpop.permute.xlu0 %115 }
  0x82   :  { %v118_v30 = vpop.permute.xlu1 %117 }
  0xca   :  { %v92_v23 = vpop.f32.mrf.mxu0 }
  0xcb   :  { %v1068_v27 = vadd.f32 %v92_v23, %v41_v22 }
  0xcc   :  { %v807_v26 = vpop.f32.mrf.mxu0 }
  0xcd   :  { %v145_v32 = vmul.f32 %v128_v16, %v1068_v27  ;;  %v143_v34 = vmul.f32 %v124_v15, %v1068_v27  ;;  %v139_v41 = vmul.f32 %v116_v36, %v1068_v27  ;;  %v141_v42 = vmul.f32 %v120_v25, %v1068_v27  ;;  %v276_v15 = vld [vmem:[%s1250_s7 + $0x28] sm:$0xff]  ;;  %v275_v16 = vld [vmem:[%s1250_s7 + $0x20] sm:$0xff] }
  0xce   :  { %v95_v28 = vpop.f32.mrf.mxu0  ;;  %825 = vmatprep.subr.mxu0 %v276_v15 }
  0xcf   :  { %v1070_v29 = vadd.f32 %v95_v28, %v41_v22  ;;  %826 = vmatpush3.msra.mxu0 %v276_v15 }
  0xd0   :  { %v808_v31 = vpop.f32.mrf.mxu0  ;;  %827 = vmatprep.subr.mxu0 %v275_v16 }
  0xd1   :  { %v146_v33 = vmul.f32 %v130_v20, %v1070_v29  ;;  %v144_v35 = vmul.f32 %v126_v18, %v1070_v29  ;;  %v140_v37 = vmul.f32 %v118_v30, %v1070_v29  ;;  %v142_v40 = vmul.f32 %v122_v24, %v1070_v29  ;;  %828 = vmatpush3.msra.mxu0 %v275_v16  ;;  %v274_v18 = vld [vmem:[%s1250_s7 + $0x18] sm:$0xff] }
  0xd2   :  { %v187_v53 = vpack.c.bf16 %v1070_v29, %v1068_v27  ;;  %829 = vmatprep.subr.mxu0 %v274_v18 }
  0xd3   :  { %v150_v38 = vpack.c.bf16 %v146_v33, %v145_v32  ;;  %v149_v39 = vpack.c.bf16 %v144_v35, %v143_v34  ;;  %v147_v43 = vpack.c.bf16 %v140_v37, %v139_v41  ;;  %v148_v44 = vpack.c.bf16 %v142_v40, %v141_v42  ;;  %830 = vmatpush3.msra.mxu0 %v274_v18 }
  0xd5   :  { %200 = vrot.lane.b32.xlu0 %v150_v38, %s924_s4  ;;  %198 = vrot.lane.b32.xlu1 %v149_v39, %s924_s4 }
  0xd9   :  { %196 = vrot.lane.b32.xlu0 %v148_v44, %s924_s4  ;;  %194 = vrot.lane.b32.xlu1 %v147_v43, %s924_s4 }
 0x147   :  { %v201_v45 = vpop.permute.xlu0 %200  ;;  %v199_v47 = vpop.permute.xlu1 %198 }
 0x148   :  { %v215_v46 = vsel %vm54_vm1, %v201_v45, 0  ;;  %v212_v48 = vsel %vm54_vm1, %v199_v47, 0 }
 0x149   :  { %810 = vmatpush3.bf16.xpose.msra.mxu1 %v215_v46 }
 0x14a   :  { %811 = vmatprep.subr.bf16.mxu1 %v921_v0 }
 0x14b   :  { %v197_v49 = vpop.permute.xlu0 %196  ;;  %v195_v51 = vpop.permute.xlu1 %194 }
 0x14c   :  { %v209_v50 = vsel %vm54_vm1, %v197_v49, 0  ;;  %v206_v52 = vsel %vm54_vm1, %v195_v51, 0 }
 0x151   :  { %812 = vmatpush3.bf16.xpose.msra.mxu1 %v212_v48 }
 0x152   :  { %813 = vmatprep.subr.bf16.mxu1 %v921_v0 }
 0x159   :  { %814 = vmatpush3.bf16.xpose.msra.mxu1 %v209_v50 }
 0x15a   :  { %815 = vmatprep.subr.bf16.mxu1 %v921_v0 }
 0x161   :  { %816 = vmatpush3.bf16.xpose.msra.mxu1 %v206_v52 }
 0x162   :  { %868 = vmatprep.subr.bf16.mxu1 %v921_v0 }
 0x168   :  { %818 = vmatmul.mubr.msk.bf16.vlgmr.msra.gmra.mxu1 %vm54_vm1, %v187_v53 }
 0x169   :  { %884 = vmatprep.mubr.msk.bf16.mxu1 %vm922_vm0, %v921_v0 }
 0x228   :  { %v251_v55 = vpop.f32.mrf.mxu1 }
 0x229   :  { %v252_v56 = vadd.f32 %v251_v55, %v188_v54 }
 0x22a   :  { %v819_v57 = vpop.f32.mrf.mxu1 }
 0x22b   :  { %v259_v59 = vsel %vm258_vm2, %v252_v56, -inf }
 0x22c   :  { %260 = vmax.xlane.f32.xlu0 %v259_v59  ;;  %v254_v60 = vpop.f32.mrf.mxu1  ;;  %v428_v59 = vsub.s32 1, %v1059_v17 }
 0x22d   :  { %v255_v61 = vadd.f32 %v254_v60, %v189_v58 }
 0x22e   :  { %v820_v62 = vpop.f32.mrf.mxu1  ;;  %v429_v60 = vrot.slane %v1065_v21, %v428_v59 }
 0x22f   :  { %v262_v63 = vsel %vm258_vm2, %v255_v61, -inf }
 0x230   :  { %263 = vmax.xlane.f32.xlu1 %v262_v63 }
 0x241   :  { %165 = vrot.lane.b32.xlu1 %v1014_v7, %s925_s16  ;;  %v272_v7 = vld [vmem:[%s1250_s7 + $0x8] sm:$0xff] }
 0x242   :  { %163 = vrot.lane.b32.xlu0 %v1001_v5, %s925_s16  ;;  %v273_v5 = vld [vmem:[%s1250_s7 + $0x10] sm:$0xff] }
 0x243   :  { %831 = vmatprep.subr.mxu0 %v273_v5 }
 0x244   :  { %832 = vmatpush3.msra.mxu0 %v273_v5 }
 0x245   :  { %161 = vrot.lane.b32.xlu1 %v1023_v9, %s925_s16  ;;  %833 = vmatprep.subr.mxu0 %v272_v7 }
 0x246   :  { %159 = vrot.lane.b32.xlu0 %v1009_v6, %s925_s16  ;;  %834 = vmatpush3.msra.mxu0 %v272_v7  ;;  %v271_v6 = vld [vmem:[%s1250_s7] sm:$0xff] }
 0x247   :  { %835 = vmatprep.subr.mxu0 %v271_v6 }
 0x248   :  { %836 = vmatpush3.msra.mxu0 %v271_v6 }
 0x249   :  { %157 = vrot.lane.b32.xlu1 %v1039_v11, %s925_s16  ;;  %840 = vmatprep.subr.bf16.mxu0 %v921_v0 }
 0x24a   :  { %155 = vrot.lane.b32.xlu0 %v1033_v10, %s925_s16 }
 0x24d   :  { %153 = vrot.lane.b32.xlu1 %v1053_v13, %s925_s16 }
 0x24e   :  { %151 = vrot.lane.b32.xlu0 %v1048_v12, %s925_s16 }
 0x2b5   :  { %v261_v9 = vpop.xlane.xlu0 %260 }
 0x2b6   :  { %v265_v11 = vsub.f32 %v252_v56, %v261_v9 }
 0x2b8   :  { %v267_v19 = vmul.f32 1.442695, %v265_v11 }
 0x2b9   :  { %v164_v20 = vpop.permute.xlu0 %163  ;;  %v264_v10 = vpop.xlane.xlu1 %263 }
 0x2ba   :  { %905 = vpow2.f32 %v267_v19  ;;  %v266_v22 = vsub.f32 %v255_v61, %v264_v10  ;;  %v181_v26 = vmul.f32 %v164_v20, %v1068_v27 }
 0x2bc   :  { %v269_v23 = vmul.f32 1.442695, %v266_v22 }
 0x2bd   :  { %v160_v24 = vpop.permute.xlu0 %159  ;;  %v166_v25 = vpop.permute.xlu1 %165 }
 0x2be   :  { %907 = vpow2.f32 %v269_v23  ;;  %v182_v13 = vmul.f32 %v166_v25, %v1070_v29  ;;  %v179_v12 = vmul.f32 %v160_v24, %v1068_v27  ;;  %v896_v25 = vld [vmem:[%s1251_s2] sm:$0xff]  }
 0x2c0   :  { %v186_v28 = vpack.c.bf16 %v182_v13, %v181_v26  ;;  %v897_v26 = vld [vmem:[%s1252_s3 + $0x38] sm:$0xff]   ;;  %v898_v13 = vld [vmem:[%s1252_s3 + $0x30] sm:$0xff]  }
 0x2c1   :  { %v156_v30 = vpop.permute.xlu0 %155  ;;  %v162_v31 = vpop.permute.xlu1 %161  ;;  %869 = vmatpush3.bf16.msra.mxu1 %v897_v26 }
 0x2c2   :  { %v180_v32 = vmul.f32 %v162_v31, %v1070_v29  ;;  %375 = vrot.lane.b32.xlu0 %v186_v28, %s925_s16  ;;  %v177_v35 = vmul.f32 %v156_v30, %v1068_v27  ;;  %870 = vmatprep.subr.bf16.mxu1 %v921_v0  ;;  %v899_v28 = vld [vmem:[%s1252_s3 + $0x28] sm:$0xff]   ;;  %v900_v30 = vld [vmem:[%s1252_s3 + $0x20] sm:$0xff]   ;;  %v901_v31 = vld [vmem:[%s1252_s3 + $0x18] sm:$0xff]  }
 0x2c4   :  { %v185_v33 = vpack.c.bf16 %v180_v32, %v179_v12 }
 0x2c5   :  { %v158_v34 = vpop.permute.xlu1 %157  ;;  %v152_v38 = vpop.permute.xlu0 %151  ;;  %871 = vmatpush3.bf16.msra.mxu1 %v898_v13 }
 0x2c6   :  { %v178_v36 = vmul.f32 %v158_v34, %v1070_v29  ;;  %373 = vrot.lane.b32.xlu1 %v185_v33, %s925_s16  ;;  %v175_v41 = vmul.f32 %v152_v38, %v1068_v27  ;;  %872 = vmatprep.subr.bf16.mxu1 %v921_v0 }
 0x2c7   :  { %v906_v37 = vpop.eup %905 }
 0x2c8   :  { %v184_v39 = vpack.c.bf16 %v178_v36, %v177_v35  ;;  %837 = vmatprep.mubr.msk.f32.mxu0 %vm258_vm2, %v906_v37 }
 0x2c9   :  { %v154_v40 = vpop.permute.xlu1 %153  ;;  %873 = vmatpush3.bf16.msra.mxu1 %v899_v28 }
 0x2ca   :  { %v176_v42 = vmul.f32 %v154_v40, %v1070_v29  ;;  %371 = vrot.lane.b32.xlu0 %v184_v39, %s925_s16  ;;  %874 = vmatprep.subr.bf16.mxu1 %v921_v0 }
 0x2cb   :  { %v908_v43 = vpop.eup %907 }
 0x2cc   :  { %v183_v44 = vpack.c.bf16 %v176_v42, %v175_v41  ;;  %838 = vmatmul.mubr.msk.f32.vlgmr.msra.gmra.mxu0 %vm258_vm2, %v908_v43  ;;  %v517_v41 = vsub.s32 3, %v1059_v17 }
 0x2cd   :  { %848 = vmatprep.mubr.msk.bf16.mxu0 %vm922_vm0, %v921_v0  ;;  %875 = vmatpush3.bf16.msra.mxu1 %v900_v30 }
 0x2ce   :  { %369 = vrot.lane.b32.xlu1 %v183_v44, %s925_s16  ;;  %432 = vrot.lane.b32.xlu0 %v975_v1, %s923_s14 }
 0x2cf   :  { %876 = vmatprep.subr.bf16.mxu1 %v921_v0 }
 0x2d1   :  { %877 = vmatpush3.bf16.msra.mxu1 %v901_v31  ;;  %v728_v31 = vsub.s32 6, %v1059_v17 }
 0x2d2   :  { %430 = vrot.lane.b32.xlu1 %v982_v2, %s923_s14  ;;  %878 = vmatprep.subr.bf16.mxu1 %v921_v0 }
 0x334   :  { %v376_v27 = vpop.permute.xlu0 %375 }
 0x335   :  { %841 = vmatpush3.bf16.msra.mxu0 %v376_v27  ;;  %v518_v27 = vrot.slane %v1065_v21, %v517_v41 }
 0x336   :  { %842 = vmatprep.subr.bf16.mxu0 %v921_v0 }
 0x338   :  { %v374_v29 = vpop.permute.xlu1 %373 }
 0x339   :  { %843 = vmatpush3.bf16.msra.mxu0 %v374_v29 }
 0x33a   :  { %844 = vmatprep.subr.bf16.mxu0 %v921_v0 }
 0x33c   :  { %v372_v45 = vpop.permute.xlu0 %371 }
 0x33d   :  { %845 = vmatpush3.bf16.msra.mxu0 %v372_v45 }
 0x33e   :  { %846 = vmatprep.subr.bf16.mxu0 %v921_v0 }
 0x340   :  { %v370_v46 = vpop.permute.xlu1 %369  ;;  %v433_v52 = vpop.permute.xlu0 %432 }
 0x341   :  { %847 = vmatpush3.bf16.msra.mxu0 %v370_v46 }
 0x342   :  { %852 = vmatprep.subr.bf16.mxu0 %v921_v0 }
 0x344   :  { %v431_v53 = vpop.permute.xlu1 %430 }
 0x38c   :  { %v839_v1 = vpop.f32.mrf.mxu0 }
 0x38d   :  { %909 = vrcp.f32 %v839_v1 }
 0x38e   :  { %v351_v47 = vpop.f32.mrf.mxu0 }
 0x38f   :  { %911 = vrcp.f32 %v351_v47  ;;  %v902_v47 = vld [vmem:[%s1252_s3 + $0x10] sm:$0xff]  }
 0x390   :  { %879 = vmatpush3.bf16.msra.mxu1 %v902_v47 }
 0x391   :  { %880 = vmatprep.subr.bf16.mxu1 %v921_v0 }
 0x39a   :  { %v910_v2 = vpop.eup %909 }
 0x39b   :  { %v363_v50 = vmul.f32 %v910_v2, %v908_v43  ;;  %v903_v2 = vld [vmem:[%s1252_s3 + $0x8] sm:$0xff]  }
 0x39c   :  { %v912_v48 = vpop.eup %911  ;;  %881 = vmatpush3.bf16.msra.mxu1 %v903_v2 }
 0x39d   :  { %v362_v49 = vmul.f32 %v912_v48, %v906_v37  ;;  %v511_v37 = vsub.s32 2, %v1059_v17  ;;  %882 = vmatprep.subr.bf16.mxu1 %v921_v0  ;;  %v904_v48 = vld [vmem:[%s1252_s3] sm:$0xff]  }
 0x39f   :  { %v364_v51 = vpack.c.bf16 %v363_v50, %v362_v49  ;;  %v512_v40 = vrot.slane %v1065_v21, %v511_v37  ;;  %v528_v49 = vsub.s32 4, %v1059_v17 }
 0x3a0   :  { %883 = vmatpush3.bf16.msra.mxu1 %v904_v48 }
 0x3a1   :  { %849 = vmatmul.mubr.msk.bf16.vlgmr.msra.gmra.mxu0 %vm258_vm2, %v364_v51  ;;  %v529_v50 = vrot.slane %v1065_v21, %v528_v49 }
 0x3a2   :  { %853 = vmatpush3.bf16.msra.mxu0 %v433_v52  ;;  %856 = vmatprep.mubr.msk.bf16.mxu0 %vm922_vm0, %v921_v0 }
 0x3a3   :  { %854 = vmatprep.subr.bf16.mxu0 %v921_v0 }
 0x3a6   :  { %855 = vmatpush3.bf16.msra.mxu0 %v431_v53 }
 0x3a7   :  { %860 = vmatprep.subr.bf16.mxu0 %v921_v0 }
 0x461   :  { %v418_v54 = vpop.f32.mrf.mxu0 }
 0x463   :  { %v850_v55 = vpop.f32.mrf.mxu0 }
 0x465   :  { %v421_v56 = vpop.f32.mrf.mxu0 }
 0x466   :  { %v425_v57 = vpack.c.bf16 %v421_v56, %v418_v54 }
 0x467   :  { %v851_v58 = vpop.f32.mrf.mxu0 }
 0x468   :  { %857 = vmatmul.mubr.msk.bf16.vlgmr.msra.gmra.mxu0 %vm54_vm1, %v425_v57 }
 0x469   :  { %864 = vmatprep.mubr.msk.bf16.mxu0 %vm922_vm0, %v921_v0 }
 0x528   :  { %v473_v61 = vpop.f32.mrf.mxu0 }
 0x529   :  { %v474_v62 = vadd.f32 %v473_v61, %v429_v60 }
 0x52a   :  { %v858_v63 = vpop.f32.mrf.mxu0 }
 0x52b   :  { %v480_v8 = vadd.f32 %v474_v62, %v991_v3 }
 0x52c   :  { %v476_v14 = vpop.f32.mrf.mxu0 }
 0x52d   :  { %v477_v15 = vadd.f32 %v476_v14, %v429_v60  ;;  %v482_v16 = vsel %vm54_vm1, %v480_v8, 0.0 }
 0x52e   :  { %483 = vadd.xlane.f32.xlu0 %v482_v16  ;;  %v859_v18 = vpop.f32.mrf.mxu0 }
 0x52f   :  { %v481_v5 = vadd.f32 %v477_v15, %v996_v4  ;;  %v895_v4 = vld [vmem:[%s1251_s2 + $0x8] sm:$0xff]  }
 0x530   :  { %861 = vmatpush3.bf16.msra.mxu0 %v895_v4 }
 0x531   :  { %v485_v7 = vsel %vm54_vm1, %v481_v5, 0.0  ;;  %862 = vmatprep.subr.bf16.mxu0 %v921_v0  ;;  %v607_v0 = vsub.s32 5, %v1059_v17 }
 0x532   :  { %486 = vadd.xlane.f32.xlu1 %v485_v7 }
 0x533   :  { %v608_v60 = vrot.slane %v1065_v21, %v607_v0 }
 0x534   :  { %863 = vmatpush3.bf16.msra.mxu0 %v896_v25 }
 0x5b7   :  { %v484_v6 = vpop.xlane.xlu0 %483 }
 0x5b8   :  { %v489_v9 = vmul.f32 0.03125, %v484_v6 }
 0x5ba   :  { %v491_v11 = vsub.f32 %v480_v8, %v489_v9 }
 0x5bb   :  { %v487_v19 = vpop.xlane.xlu1 %486 }
 0x5bc   :  { %v490_v20 = vmul.f32 0.03125, %v487_v19  ;;  %v493_v10 = vmul.f32 %v491_v11, %v491_v11 }
 0x5be   :  { %v492_v22 = vsub.f32 %v481_v5, %v490_v20  ;;  %v495_v3 = vsel %vm54_vm1, %v493_v10, 0.0 }
 0x5bf   :  { %496 = vadd.xlane.f32.xlu0 %v495_v3 }
 0x5c0   :  { %v494_v23 = vmul.f32 %v492_v22, %v492_v22 }
 0x5c2   :  { %v498_v24 = vsel %vm54_vm1, %v494_v23, 0.0 }
 0x5c3   :  { %499 = vadd.xlane.f32.xlu0 %v498_v24 }
 0x648   :  { %v497_v12 = vpop.xlane.xlu0 %496 }
 0x649   :  { %v501_v32 = vmul.f32 0.03125, %v497_v12  ;;  %v734_v12 = vsub.s32 7, %v1059_v17 }
 0x64b   :  { %v503_v33 = vadd.f32 1e-05, %v501_v32  ;;  %v729_v32 = vrot.slane %v1065_v21, %v728_v31 }
 0x64c   :  { %v500_v34 = vpop.xlane.xlu0 %499 }
 0x64d   :  { %913 = vrsqrt.f32 %v503_v33  ;;  %v502_v35 = vmul.f32 0.03125, %v500_v34  ;;  %v735_v34 = vrot.slane %v1065_v21, %v734_v12 }
 0x64f   :  { %v504_v36 = vadd.f32 1e-05, %v502_v35 }
 0x651   :  { %915 = vrsqrt.f32 %v504_v36 }
 0x65a   :  { %v914_v38 = vpop.eup %913 }
 0x65b   :  { %v507_v39 = vmul.f32 %v914_v38, %v491_v11 }
 0x65d   :  { %v513_v44 = vmul.f32 %v512_v40, %v507_v39 }
 0x65e   :  { %v916_v42 = vpop.eup %915 }
 0x65f   :  { %v508_v43 = vmul.f32 %v916_v42, %v492_v22  ;;  %v519_v45 = vadd.f32 %v518_v27, %v513_v44 }
 0x661   :  { %v514_v29 = vmul.f32 %v512_v40, %v508_v43 }
 0x663   :  { %v520_v46 = vadd.f32 %v518_v27, %v514_v29 }
 0x665   :  { %v521_v1 = vpack.c.bf16 %v520_v46, %v519_v45 }
 0x667   :  { %865 = vmatmul.mubr.msk.bf16.vlgmr.msra.gmra.mxu0 %vm54_vm1, %v521_v1 }
 0x727   :  { %v579_v51 = vpop.f32.mrf.mxu0 }
 0x728   :  { %v580_v53 = vadd.f32 %v579_v51, %v529_v50 }
 0x729   :  { %v866_v52 = vpop.f32.mrf.mxu0 }
 0x72a   :  { %v586_v57 = vmax.f32 %v580_v53, 0.0 }
 0x72b   :  { %v582_v54 = vpop.f32.mrf.mxu0 }
 0x72c   :  { %v583_v55 = vadd.f32 %v582_v54, %v529_v50 }
 0x72d   :  { %v867_v56 = vpop.f32.mrf.mxu0 }
 0x72e   :  { %v587_v58 = vmax.f32 %v583_v55, 0.0 }
 0x730   :  { %v588_v59 = vpack.c.bf16 %v587_v58, %v586_v57 }
 0x732   :  { %885 = vmatmul.mubr.bf16.vlgmr.msra.gmra.mxu1 %v588_v59 }
 0x7f2   :  { %v691_v61 = vpop.f32.mrf.mxu1 }
 0x7f3   :  { %v692_v62 = vadd.f32 %v691_v61, %v608_v60 }
 0x7f4   :  { %v886_v63 = vpop.f32.mrf.mxu1 }
 0x7f5   :  { %v698_v8 = vadd.f32 %v692_v62, %v519_v45 }
 0x7f6   :  { %v694_v14 = vpop.f32.mrf.mxu1 }
 0x7f7   :  { %v695_v15 = vadd.f32 %v694_v14, %v608_v60  ;;  %v700_v16 = vsel %vm54_vm1, %v698_v8, 0.0 }
 0x7f8   :  { %701 = vadd.xlane.f32.xlu1 %v700_v16  ;;  %v887_v18 = vpop.f32.mrf.mxu1 }
 0x7f9   :  { %v699_v5 = vadd.f32 %v695_v15, %v520_v46 }
 0x7fb   :  { %v703_v7 = vsel %vm54_vm1, %v699_v5, 0.0 }
 0x7fc   :  { %704 = vadd.xlane.f32.xlu0 %v703_v7 }
 0x881   :  { %v702_v6 = vpop.xlane.xlu1 %701 }
 0x882   :  { %v706_v9 = vmul.f32 0.03125, %v702_v6 }
 0x884   :  { %v708_v11 = vsub.f32 %v698_v8, %v706_v9 }
 0x885   :  { %v705_v19 = vpop.xlane.xlu0 %704 }
 0x886   :  { %v707_v20 = vmul.f32 0.03125, %v705_v19  ;;  %v710_v10 = vmul.f32 %v708_v11, %v708_v11 }
 0x888   :  { %v709_v22 = vsub.f32 %v699_v5, %v707_v20  ;;  %v712_v3 = vsel %vm54_vm1, %v710_v10, 0.0 }
 0x889   :  { %713 = vadd.xlane.f32.xlu1 %v712_v3 }
 0x88a   :  { %v711_v23 = vmul.f32 %v709_v22, %v709_v22 }
 0x88c   :  { %v715_v24 = vsel %vm54_vm1, %v711_v23, 0.0 }
 0x88d   :  { %716 = vadd.xlane.f32.xlu0 %v715_v24 }
 0x912   :  { %v714_v4 = vpop.xlane.xlu1 %713 }
 0x913   :  { %v718_v25 = vmul.f32 0.03125, %v714_v4 }
 0x915   :  { %v720_v26 = vadd.f32 1e-05, %v718_v25 }
 0x916   :  { %v717_v13 = vpop.xlane.xlu0 %716 }
 0x917   :  { %917 = vrsqrt.f32 %v720_v26  ;;  %v719_v28 = vmul.f32 0.03125, %v717_v13 }
 0x919   :  { %v721_v30 = vadd.f32 1e-05, %v719_v28 }
 0x91b   :  { %919 = vrsqrt.f32 %v721_v30 }
 0x924   :  { %v918_v33 = vpop.eup %917 }
 0x925   :  { %v724_v35 = vmul.f32 %v918_v33, %v708_v11 }
 0x927   :  { %v730_v36 = vmul.f32 %v729_v32, %v724_v35 }
 0x928   :  { %v920_v37 = vpop.eup %919 }
 0x929   :  { %v736_v38 = vadd.f32 %v735_v34, %v730_v36  ;;  %v725_v39 = vmul.f32 %v920_v37, %v709_v22 }
 0x92b   :  { %738 = vst.msk [vmem:[%s1253_s8] sm:$0xff] %vm54_vm1, %v736_v38  ;;  %v731_v40 = vmul.f32 %v729_v32, %v725_v39 }
 0x92d   :  { %v737_v41 = vadd.f32 %v735_v34, %v731_v40 }
 0x92f   :  { %739 = vst.msk [vmem:[%s1253_s8 + $0x8] sm:$0xff] %vm54_vm1, %v737_v41 }

</bundles_post_ra>
